<compile_context>
chip_gen: v6e
topology: v6e:2x2x1
jax: 0.10.0
libtpu: 0.0.40
codegen_flags: <defaults>
</compile_context>

<pallas_src>
import functools

import jax
import jax.numpy as jnp
from jax.experimental import pallas as pl
from jax.experimental.pallas import tpu as pltpu


def _dgn_kernel(mat_ref, alive_ref, w_ref, b_ref, out_ref, *,
                scale, heads, qd, mxu_dtype):
    """One row-tile of the DGNComm graph-attention forward.

    mat_ref  : [A, tn, H]  stacked per-agent obs rows; agent 0 == query agent (unscaled)
    alive_ref: [A, tn, 1]  alive masks (agent 0 == query agent's own mask)
    w_ref    : [H, 3D]     fused [Wq || Wk || Wv], each section head-major
    b_ref    : [1, 3D]     fused [bq || bk || bv]
    out_ref  : [tn, H]     obs[key] + concat_heads(attention output)

    All math is per-row, so a partial last grid block is safe: out-of-range rows hold
    undefined inputs but their outputs are write-masked by Pallas.
    """
    mat = mat_ref[...]
    alive = alive_ref[...]
    w = w_ref[...]
    b = b_ref[...]

    A, tn, H = mat.shape
    D = heads * qd                       # == H (asserted in the wrapper)

    # alive_agent_num = clamp(sum over agents, min=2); single [tn,1] reciprocal column.
    inv_alive = 1.0 / jnp.maximum(jnp.sum(alive, axis=0), 2.0)            # [tn, 1]

    # One fused MXU pass for Q || K || V over all agents and all heads.
    lhs = mat if mxu_dtype is None else mat.astype(mxu_dtype)
    rhs = w if mxu_dtype is None else w.astype(mxu_dtype)
    if tn % 8 == 0:
        qkv = jnp.dot(lhs.reshape(A * tn, H), rhs,
                      preferred_element_type=jnp.float32).reshape(A, tn, 3 * D)
    else:
        # Small single-block path (tn == N, not sublane-aligned): per-agent 2-D dots avoid
        # a misaligned [A*tn, H] relayout; performance is irrelevant at these sizes.
        qkv = jnp.stack([jnp.dot(lhs[a], rhs, preferred_element_type=jnp.float32)
                         for a in range(A)], axis=0)                      # [A, tn, 3D]

    # Q of the query agent: exactly obs[key] @ Wq + bq (row-unscaled).
    q = qkv[0, :, :D] + b[:, :D]                                          # [tn, D]

    # Post-matmul per-agent row scaling: Linear(s*x) = s*(x@W) + bias for per-row scalar s,
    # so applying s = alive/alive_num (agent 0: 1/alive_num — the query row is NOT masked by
    # its own alive flag) on the narrow [A,tn,2D] result is exact and cheaper than scaling
    # the [A,tn,H] inputs.  Done in one batched shot; bias broadcast emitted once.
    not_query = jax.lax.broadcasted_iota(jnp.int32, (A, 1, 1), 0) > 0
    s_all = jnp.where(not_query, alive, 1.0) * inv_alive                  # [A, tn, 1]
    kv = qkv[:, :, D:] * s_all + b[:, D:]                                 # [A, tn, 2D]
    k_all = kv[:, :, :D]                                                  # [A, tn, D]
    v_all = kv[:, :, D:]                                                  # [A, tn, D]

    # Per-head softmax over agents, batched over the A axis.  Axis-0 max/sum are plain
    # elementwise ops across agent tiles; the only cross-lane work is the qd-wide logit sum.
    prod = q[None, :, :] * k_all                                          # [A, tn, D]
    outs = []
    for h in range(heads):
        lo = h * qd
        logit = jnp.sum(prod[:, :, lo:lo + qd], axis=-1, keepdims=True)   # [A, tn, 1]
        m = jnp.max(logit, axis=0)                                        # [tn, 1]
        e = jnp.exp(logit - m)                                            # [A, tn, 1]
        w_att = e * (scale / jnp.sum(e, axis=0))                          # scale AFTER softmax
        outs.append(jnp.sum(w_att * v_all[:, :, lo:lo + qd], axis=0))     # [tn, qd]
    gnn = outs[0] if heads == 1 else jnp.concatenate(outs, axis=-1)       # [tn, D]

    # TODO(synk): lane-dense output packing ([tn,32] -> [tn//4,128]) conflicts with the
    # no-padding/partial-block path for arbitrary N; adopt only after measuring the in-kernel
    # relayout against the masked-store cost (the output is the minority HBM stream here).
    out_ref[...] = (mat[0] + gnn).astype(out_ref.dtype)


def _num_tensorcores():
    """Best-effort TensorCore count for grid-step sizing (v7x has 2 TCs per chip)."""
    try:
        dev = jax.devices()[0]
        n = getattr(dev, "num_cores", None)
        if n:
            return int(n)
        kind = str(getattr(dev, "device_kind", "")).lower()
        return 2 if ("v7" in kind or "7x" in kind) else 1
    except Exception:
        return 1


def dgn_comm_forward(obs_all, alive_all, wq, bq, wk, bk, wv, bv, *,
                     scale, tn=2048, min_steps=None, mxu_dtype=None):
    """DGNComm.forward on pre-encoded observations.

    obs_all  : [A, N, H]  per-agent encoded obs rows, agent 0 == the query agent `key`
    alive_all: [A, N, 1]  alive masks, same agent order
    wq/wk/wv : [heads, H, qd] (pre-transposed vs torch's [out,in]); bq/bk/bv: [heads, 1, qd]
    Returns  : [N, H] == obs[key] + concat_heads(attention)
    """
    A, N, H = obs_all.shape
    heads, h_in, qd = wq.shape
    D = heads * qd
    if h_in != H or D != H:
        raise ValueError(f"DGNComm requires atten_head*q_dim == hidden ({heads}*{qd} != {H})")

    # Fuse every per-head Linear into one resident [H, 3D] operand (one MXU pass per tile).
    def cat_w(wgt):     # [heads, H, qd] -> [H, heads*qd], head-major columns
        return jnp.transpose(wgt, (1, 0, 2)).reshape(H, D)

    def cat_b(bias):    # [heads, 1, qd] -> [1, heads*qd]
        return jnp.transpose(bias, (1, 0, 2)).reshape(1, D)

    w_all = jnp.concatenate([cat_w(wq), cat_w(wk), cat_w(wv)], axis=-1)   # [H, 3D]
    b_all = jnp.concatenate([cat_b(bq), cat_b(bk), cat_b(bv)], axis=-1)   # [1, 3D]

    # Row-tile selection.  No padding and no output slice: the grid uses cdiv and the last
    # block may be partial (safe — see kernel docstring).  Big tiles amortize the ~0.35us
    # per-step pipeline overhead; on dual-TC parts keep >= 2 pipelined steps per core.
    if min_steps is None:
        ncores = _num_tensorcores()
        min_steps = 2 * ncores if ncores > 1 else 1
    tn = max(8, (int(tn) // 8) * 8)
    if min_steps > 1:
        tn = min(tn, max(8, (pl.cdiv(N, min_steps) // 8) * 8))
    if tn >= N:
        tn = N                      # single block; block dims == full dims need no alignment
    grid = (pl.cdiv(N, tn),)

    kernel = functools.partial(_dgn_kernel, scale=float(scale), heads=heads, qd=qd,
                               mxu_dtype=mxu_dtype)
    resident = lambda i: (0, 0)
    return pl.pallas_call(
        kernel,
        out_shape=jax.ShapeDtypeStruct((N, H), obs_all.dtype),
        grid_spec=pltpu.PrefetchScalarGridSpec(
            num_scalar_prefetch=0,
            grid=grid,
            in_specs=[
                pl.BlockSpec((A, tn, H), lambda i: (0, i, 0)),   # stacked agent rows (0=query)
                pl.BlockSpec((A, tn, 1), lambda i: (0, i, 0)),   # alive masks
                pl.BlockSpec((H, 3 * D), resident),              # Wq || Wk || Wv (head-fused)
                pl.BlockSpec((1, 3 * D), resident),              # bq || bk || bv
            ],
            out_specs=pl.BlockSpec((tn, H), lambda i: (i, 0)),
        ),
        compiler_params=pltpu.CompilerParams(dimension_semantics=("parallel",)),
    )(obs_all, alive_all, w_all, b_all)
    # TODO(synk): on v6e/v7x pass mxu_dtype=jnp.bfloat16 (and feed bf16 activations from the
    # encoder) to halve the dominant [A,N,H] HBM stream and double MXU rate; it breaks the
    # 1e-5 f32 check below, so it is off by default and must be enabled deliberately.


def _reference(obs_dict, alive_dict, query_key, agent_keys,
               wq, bq, wk, bk, wv, bv, scale):
    """Pure-JAX mirror of DGNComm.forward / DGNComm.gcn."""
    alive_stack = jnp.stack([alive_dict[k] for k in agent_keys], axis=2)   # [B,T,A,1]
    alive_num = jnp.maximum(jnp.sum(alive_stack, axis=2), 2.0)             # [B,T,1]
    matrix = [obs_dict[query_key]]
    for k in agent_keys:
        if k != query_key:
            matrix.append(obs_dict[k] * alive_dict[k])
    matrix = [m / alive_num for m in matrix]
    M = jnp.stack(matrix, axis=-2)                                         # [B,T,A,H]
    obs = obs_dict[query_key]
    heads = wq.shape[0]
    outs = []
    for h in range(heads):
        q = obs @ wq[h] + bq[h][0]                                         # [B,T,qd]
        K = M @ wk[h] + bk[h][0]                                           # [B,T,A,qd]
        V = M @ wv[h] + bv[h][0]
        logits = jnp.einsum('btd,btad->bta', q, K)
        probs = jax.nn.softmax(logits, axis=-1) * scale
        outs.append(jnp.einsum('bta,btad->btd', probs, V))
    return obs + jnp.concatenate(outs, axis=-1)


if __name__ == "__main__":
    B, T, A, H, HEADS = 2, 9, 3, 32, 2      # batch, seq, n_agents, recurrent_hidden, atten_head
    QD = H // HEADS
    SCALE = QD ** (-0.5)
    N = B * T                               # 18 rows

    root = jax.random.PRNGKey(0)
    keys = jax.random.split(root, 16)
    agent_keys = [f"agent_{i}" for i in range(A)]
    query_key = agent_keys[0]

    # obs dict: already passed through obs_encoder, so last dim == recurrent_hidden_size
    obs_dict = {k: jax.random.normal(keys[i], (B, T, H), jnp.float32)
                for i, k in enumerate(agent_keys)}
    alive_dict = {k: (jax.random.uniform(keys[3 + i], (B, T, 1)) > 0.3).astype(jnp.float32)
                  for i, k in enumerate(agent_keys)}

    # deterministic Linear params (torch Linear is [out,in]; stored pre-transposed [in,out])
    def init(k, shape):
        return jax.random.uniform(k, shape, jnp.float32, -1.0, 1.0) * (H ** -0.5)

    wq = init(keys[6], (HEADS, H, QD)); bq = init(keys[7], (HEADS, 1, QD))
    wk = init(keys[8], (HEADS, H, QD)); bk = init(keys[9], (HEADS, 1, QD))
    wv = init(keys[10], (HEADS, H, QD)); bv = init(keys[11], (HEADS, 1, QD))

    # kernel inputs (glue reshapes only): query agent first in the stacked order
    mat_order = [query_key] + [k for k in agent_keys if k != query_key]
    obs_all = jnp.stack([obs_dict[k].reshape(N, H) for k in mat_order], axis=0)      # [A,N,H]
    alive_all = jnp.stack([alive_dict[k].reshape(N, 1) for k in mat_order], axis=0)  # [A,N,1]

    ref = _reference(obs_dict, alive_dict, query_key, agent_keys,
                     wq, bq, wk, bk, wv, bv, SCALE)
    ref = jax.block_until_ready(ref).reshape(N, H)

    # Default config: single full block (tn == N).
    out = dgn_comm_forward(obs_all, alive_all, wq, bq, wk, bk, wv, bv, scale=SCALE)
    out = jax.block_until_ready(out)
    if not jnp.allclose(out, ref, rtol=1e-5, atol=1e-5):
        raise AssertionError("Pallas kernel output does not match reference (single block)")

    # Multi-step grid with a partial last block (N=18, tn=8 -> 3 steps, last block 2 rows):
    # exercises the no-padding cdiv path that the large-N production config uses.
    out2 = dgn_comm_forward(obs_all, alive_all, wq, bq, wk, bk, wv, bv,
                            scale=SCALE, tn=8, min_steps=1)
    out2 = jax.block_until_ready(out2)
    if not jnp.allclose(out2, ref, rtol=1e-5, atol=1e-5):
        raise AssertionError("Pallas kernel output does not match reference (partial block)")

    print("KERNEL_OK")
</pallas_src>

<mosaic_0001>
module attributes {stable_mosaic.version = 11 : i64} {
  func.func @_dgn_kernel(%arg0: i32, %arg1: memref<3x18x32xf32, #tpu.memory_space<vmem>>, %arg2: memref<3x18x1xf32, #tpu.memory_space<vmem>>, %arg3: memref<32x96xf32, #tpu.memory_space<vmem>>, %arg4: memref<1x96xf32, #tpu.memory_space<vmem>>, %arg5: memref<18x32xf32, #tpu.memory_space<vmem>>) attributes {dimension_semantics = [#tpu.dimension_semantics<parallel>], iteration_bounds = array<i64: 1>, scalar_prefetch = 0 : i64, scratch_operands = 0 : i64, tpu.core_type = #tpu.core_type<tc>, window_params = [{transform_indices = @transform_0, window_bounds = array<i64: 3, 18, 32>}, {transform_indices = @transform_1, window_bounds = array<i64: 3, 18, 1>}, {pipeline_mode = #tpu.pipeline_mode<synchronous>, transform_indices = @transform_2, window_bounds = array<i64: 32, 96>}, {pipeline_mode = #tpu.pipeline_mode<synchronous>, transform_indices = @transform_3, window_bounds = array<i64: 1, 96>}, {transform_indices = @transform_4, window_bounds = array<i64: 18, 32>}]} {
    %c0 = arith.constant 0 : index
    %c0_0 = arith.constant 0 : index
    %c0_1 = arith.constant 0 : index
    %0 = vector.load %arg1[%c0, %c0_0, %c0_1] : memref<3x18x32xf32, #tpu.memory_space<vmem>>, vector<3x18x32xf32>
    %c0_2 = arith.constant 0 : index
    %c0_3 = arith.constant 0 : index
    %c0_4 = arith.constant 0 : index
    %1 = vector.load %arg2[%c0_2, %c0_3, %c0_4] : memref<3x18x1xf32, #tpu.memory_space<vmem>>, vector<3x18x1xf32>
    %c0_5 = arith.constant 0 : index
    %c0_6 = arith.constant 0 : index
    %2 = vector.load %arg3[%c0_5, %c0_6] : memref<32x96xf32, #tpu.memory_space<vmem>>, vector<32x96xf32>
    %c0_7 = arith.constant 0 : index
    %c0_8 = arith.constant 0 : index
    %3 = vector.load %arg4[%c0_7, %c0_8] : memref<1x96xf32, #tpu.memory_space<vmem>>, vector<1x96xf32>
    %cst = arith.constant dense<0.000000e+00> : vector<18x1xf32>
    %4 = vector.multi_reduction <add>, %1, %cst [0] : vector<3x18x1xf32> to vector<18x1xf32>
    %cst_9 = arith.constant 2.000000e+00 : f32
    %5 = vector.broadcast %cst_9 : f32 to vector<18x1xf32>
    %6 = arith.maximumf %4, %5 : vector<18x1xf32>
    %cst_10 = arith.constant 1.000000e+00 : f32
    %7 = vector.broadcast %cst_10 : f32 to vector<18x1xf32>
    %8 = arith.divf %7, %6 : vector<18x1xf32>
    %9 = vector.extract_strided_slice %0 {offsets = [0, 0, 0], sizes = [1, 18, 32], strides = [1, 1, 1]} : vector<3x18x32xf32> to vector<1x18x32xf32>
    %10 = vector.shape_cast %9 : vector<1x18x32xf32> to vector<18x32xf32>
    %cst_11 = arith.constant dense<0.000000e+00> : vector<18x96xf32>
    %11 = tpu.matmul %10, %2, %cst_11 {dimension_numbers = #tpu.dot_dimension_numbers<[1], [0], [0], [1], [0, 0, 1, 1], [], []>} : vector<18x32xf32>, vector<32x96xf32>, vector<18x96xf32> -> vector<18x96xf32>
    %12 = vector.extract_strided_slice %0 {offsets = [1, 0, 0], sizes = [1, 18, 32], strides = [1, 1, 1]} : vector<3x18x32xf32> to vector<1x18x32xf32>
    %13 = vector.shape_cast %12 : vector<1x18x32xf32> to vector<18x32xf32>
    %cst_12 = arith.constant dense<0.000000e+00> : vector<18x96xf32>
    %14 = tpu.matmul %13, %2, %cst_12 {dimension_numbers = #tpu.dot_dimension_numbers<[1], [0], [0], [1], [0, 0, 1, 1], [], []>} : vector<18x32xf32>, vector<32x96xf32>, vector<18x96xf32> -> vector<18x96xf32>
    %15 = vector.extract_strided_slice %0 {offsets = [2, 0, 0], sizes = [1, 18, 32], strides = [1, 1, 1]} : vector<3x18x32xf32> to vector<1x18x32xf32>
    %16 = vector.shape_cast %15 : vector<1x18x32xf32> to vector<18x32xf32>
    %cst_13 = arith.constant dense<0.000000e+00> : vector<18x96xf32>
    %17 = tpu.matmul %16, %2, %cst_13 {dimension_numbers = #tpu.dot_dimension_numbers<[1], [0], [0], [1], [0, 0, 1, 1], [], []>} : vector<18x32xf32>, vector<32x96xf32>, vector<18x96xf32> -> vector<18x96xf32>
    %18 = vector.shape_cast %11 : vector<18x96xf32> to vector<1x18x96xf32>
    %19 = vector.shape_cast %14 : vector<18x96xf32> to vector<1x18x96xf32>
    %20 = vector.shape_cast %17 : vector<18x96xf32> to vector<1x18x96xf32>
    %21 = tpu.concatenate %18, %19, %20 in 0 : vector<1x18x96xf32>, vector<1x18x96xf32>, vector<1x18x96xf32> -> vector<3x18x96xf32>
    %22 = vector.extract_strided_slice %21 {offsets = [0, 0, 0], sizes = [1, 18, 32], strides = [1, 1, 1]} : vector<3x18x96xf32> to vector<1x18x32xf32>
    %23 = vector.shape_cast %22 : vector<1x18x32xf32> to vector<18x32xf32>
    %24 = vector.extract_strided_slice %3 {offsets = [0, 0], sizes = [1, 32], strides = [1, 1]} : vector<1x96xf32> to vector<1x32xf32>
    %25 = vector.broadcast %24 : vector<1x32xf32> to vector<18x32xf32>
    %26 = arith.addf %23, %25 : vector<18x32xf32>
    %27 = tpu.iota {dimensions = array<i32: 0>} : vector<3x1x1xi32>
    %c0_i32 = arith.constant 0 : i32
    %28 = vector.broadcast %c0_i32 : i32 to vector<3x1x1xi32>
    %29 = arith.cmpi sgt, %27, %28 : vector<3x1x1xi32>
    %cst_14 = arith.constant 1.000000e+00 : f32
    %30 = vector.shape_cast %29 : vector<3x1x1xi1> to vector<3x1x1xi1>
    %31 = vector.broadcast %30 : vector<3x1x1xi1> to vector<3x18x1xi1>
    %32 = vector.broadcast %cst_14 : f32 to vector<3x18x1xf32>
    %33 = arith.select %31, %1, %32 : vector<3x18x1xi1>, vector<3x18x1xf32>
    %34 = vector.shape_cast %8 : vector<18x1xf32> to vector<1x18x1xf32>
    %35 = vector.broadcast %34 : vector<1x18x1xf32> to vector<3x18x1xf32>
    %36 = arith.mulf %33, %35 : vector<3x18x1xf32>
    %37 = vector.extract_strided_slice %21 {offsets = [0, 0, 32], sizes = [3, 18, 64], strides = [1, 1, 1]} : vector<3x18x96xf32> to vector<3x18x64xf32>
    %38 = vector.broadcast %36 : vector<3x18x1xf32> to vector<3x18x64xf32>
    %39 = arith.mulf %37, %38 : vector<3x18x64xf32>
    %40 = vector.extract_strided_slice %3 {offsets = [0, 32], sizes = [1, 64], strides = [1, 1]} : vector<1x96xf32> to vector<1x64xf32>
    %41 = vector.shape_cast %40 : vector<1x64xf32> to vector<1x1x64xf32>
    %42 = vector.broadcast %41 : vector<1x1x64xf32> to vector<3x18x64xf32>
    %43 = arith.addf %39, %42 : vector<3x18x64xf32>
    %44 = vector.extract_strided_slice %43 {offsets = [0, 0, 0], sizes = [3, 18, 32], strides = [1, 1, 1]} : vector<3x18x64xf32> to vector<3x18x32xf32>
    %45 = vector.extract_strided_slice %43 {offsets = [0, 0, 32], sizes = [3, 18, 32], strides = [1, 1, 1]} : vector<3x18x64xf32> to vector<3x18x32xf32>
    %46 = vector.shape_cast %26 : vector<18x32xf32> to vector<1x18x32xf32>
    %47 = vector.broadcast %46 : vector<1x18x32xf32> to vector<3x18x32xf32>
    %48 = arith.mulf %47, %44 : vector<3x18x32xf32>
    %49 = vector.extract_strided_slice %48 {offsets = [0, 0, 0], sizes = [3, 18, 16], strides = [1, 1, 1]} : vector<3x18x32xf32> to vector<3x18x16xf32>
    %cst_15 = arith.constant dense<0.000000e+00> : vector<3x18xf32>
    %50 = vector.multi_reduction <add>, %49, %cst_15 [2] : vector<3x18x16xf32> to vector<3x18xf32>
    %51 = vector.shape_cast %50 : vector<3x18xf32> to vector<3x18x1xf32>
    %cst_16 = arith.constant dense<0xFF800000> : vector<18x1xf32>
    %52 = vector.multi_reduction <maximumf>, %51, %cst_16 [0] : vector<3x18x1xf32> to vector<18x1xf32>
    %53 = vector.shape_cast %52 : vector<18x1xf32> to vector<1x18x1xf32>
    %54 = vector.broadcast %53 : vector<1x18x1xf32> to vector<3x18x1xf32>
    %55 = arith.subf %51, %54 : vector<3x18x1xf32>
    %56 = math.exp %55 : vector<3x18x1xf32>
    %cst_17 = arith.constant dense<0.000000e+00> : vector<18x1xf32>
    %57 = vector.multi_reduction <add>, %56, %cst_17 [0] : vector<3x18x1xf32> to vector<18x1xf32>
    %cst_18 = arith.constant 2.500000e-01 : f32
    %58 = vector.broadcast %cst_18 : f32 to vector<18x1xf32>
    %59 = arith.divf %58, %57 : vector<18x1xf32>
    %60 = vector.shape_cast %59 : vector<18x1xf32> to vector<1x18x1xf32>
    %61 = vector.broadcast %60 : vector<1x18x1xf32> to vector<3x18x1xf32>
    %62 = arith.mulf %56, %61 : vector<3x18x1xf32>
    %63 = vector.extract_strided_slice %45 {offsets = [0, 0, 0], sizes = [3, 18, 16], strides = [1, 1, 1]} : vector<3x18x32xf32> to vector<3x18x16xf32>
    %64 = vector.broadcast %62 : vector<3x18x1xf32> to vector<3x18x16xf32>
    %65 = arith.mulf %64, %63 : vector<3x18x16xf32>
    %cst_19 = arith.constant dense<0.000000e+00> : vector<18x16xf32>
    %66 = vector.multi_reduction <add>, %65, %cst_19 [0] : vector<3x18x16xf32> to vector<18x16xf32>
    %67 = vector.extract_strided_slice %48 {offsets = [0, 0, 16], sizes = [3, 18, 16], strides = [1, 1, 1]} : vector<3x18x32xf32> to vector<3x18x16xf32>
    %cst_20 = arith.constant dense<0.000000e+00> : vector<3x18xf32>
    %68 = vector.multi_reduction <add>, %67, %cst_20 [2] : vector<3x18x16xf32> to vector<3x18xf32>
    %69 = vector.shape_cast %68 : vector<3x18xf32> to vector<3x18x1xf32>
    %cst_21 = arith.constant dense<0xFF800000> : vector<18x1xf32>
    %70 = vector.multi_reduction <maximumf>, %69, %cst_21 [0] : vector<3x18x1xf32> to vector<18x1xf32>
    %71 = vector.shape_cast %70 : vector<18x1xf32> to vector<1x18x1xf32>
    %72 = vector.broadcast %71 : vector<1x18x1xf32> to vector<3x18x1xf32>
    %73 = arith.subf %69, %72 : vector<3x18x1xf32>
    %74 = math.exp %73 : vector<3x18x1xf32>
    %cst_22 = arith.constant dense<0.000000e+00> : vector<18x1xf32>
    %75 = vector.multi_reduction <add>, %74, %cst_22 [0] : vector<3x18x1xf32> to vector<18x1xf32>
    %cst_23 = arith.constant 2.500000e-01 : f32
    %76 = vector.broadcast %cst_23 : f32 to vector<18x1xf32>
    %77 = arith.divf %76, %75 : vector<18x1xf32>
    %78 = vector.shape_cast %77 : vector<18x1xf32> to vector<1x18x1xf32>
    %79 = vector.broadcast %78 : vector<1x18x1xf32> to vector<3x18x1xf32>
    %80 = arith.mulf %74, %79 : vector<3x18x1xf32>
    %81 = vector.extract_strided_slice %45 {offsets = [0, 0, 16], sizes = [3, 18, 16], strides = [1, 1, 1]} : vector<3x18x32xf32> to vector<3x18x16xf32>
    %82 = vector.broadcast %80 : vector<3x18x1xf32> to vector<3x18x16xf32>
    %83 = arith.mulf %82, %81 : vector<3x18x16xf32>
    %cst_24 = arith.constant dense<0.000000e+00> : vector<18x16xf32>
    %84 = vector.multi_reduction <add>, %83, %cst_24 [0] : vector<3x18x16xf32> to vector<18x16xf32>
    %85 = tpu.concatenate %66, %84 in 1 : vector<18x16xf32>, vector<18x16xf32> -> vector<18x32xf32>
    %86 = vector.extract_strided_slice %0 {offsets = [0, 0, 0], sizes = [1, 18, 32], strides = [1, 1, 1]} : vector<3x18x32xf32> to vector<1x18x32xf32>
    %87 = vector.shape_cast %86 : vector<1x18x32xf32> to vector<18x32xf32>
    %88 = arith.addf %87, %85 : vector<18x32xf32>
    %c0_25 = arith.constant 0 : index
    %c0_26 = arith.constant 0 : index
    %89 = vector.load %arg5[%c0_25, %c0_26] : memref<18x32xf32, #tpu.memory_space<vmem>>, vector<18x32xf32>
    tpu.vector_store %arg5[%c0_25, %c0_26], %88 {strides = array<i32>} : memref<18x32xf32, #tpu.memory_space<vmem>>, vector<18x32xf32>,
    return
  }
  func.func @transform_0(%arg0: i32) -> (i32, i32, i32) {
    %c0_i32 = arith.constant 0 : i32
    %c0_i32_0 = arith.constant 0 : i32
    %c0_i32_1 = arith.constant 0 : i32
    return %c0_i32, %arg0, %c0_i32_0 : i32, i32, i32
  }
  func.func @transform_1(%arg0: i32) -> (i32, i32, i32) {
    %c0_i32 = arith.constant 0 : i32
    %c0_i32_0 = arith.constant 0 : i32
    %c0_i32_1 = arith.constant 0 : i32
    return %c0_i32, %arg0, %c0_i32_0 : i32, i32, i32
  }
  func.func @transform_2(%arg0: i32) -> (i32, i32) {
    %c0_i32 = arith.constant 0 : i32
    %c0_i32_0 = arith.constant 0 : i32
    %c0_i32_1 = arith.constant 0 : i32
    return %c0_i32, %c0_i32_0 : i32, i32
  }
  func.func @transform_3(%arg0: i32) -> (i32, i32) {
    %c0_i32 = arith.constant 0 : i32
    %c0_i32_0 = arith.constant 0 : i32
    %c0_i32_1 = arith.constant 0 : i32
    return %c0_i32, %c0_i32_0 : i32, i32
  }
  func.func @transform_4(%arg0: i32) -> (i32, i32) {
    %c0_i32 = arith.constant 0 : i32
    %c0_i32_0 = arith.constant 0 : i32
    return %arg0, %c0_i32 : i32, i32
  }
}

</mosaic_0001>

<bundles_post_ra>
// kernel: tpu_custom_call.1
= control target key start
LH: loop header
LB: loop body
LE: loop exit
PB: predicated region body
PF: predicated region fallthrough
CT: control target
= control target key end

     0   :  { %9 = vsyncpa [#allocation3], 0  ;;  %s1326_s0 = inlined_call_operand.vmem [shape: f32[3,18,32], index: 0, kind: input, shape index: {}]   ;;  %s1327_s1 = inlined_call_operand.vmem [shape: f32[3,18,1], index: 1, kind: input, shape index: {}]   ;;  %s1328_s2 = inlined_call_operand.hbm [shape: f32[32,96], index: 2, kind: input, shape index: {}]   ;;  %s1329_s3 = inlined_call_operand.vmem [shape: f32[1,96], index: 3, kind: input, shape index: {}]   ;;  %s1330_s4 = inlined_call_operand.hbm [shape: f32[18,32], index: 4, kind: output, shape index: {}]  }
   0x1   :  { %10 = vsyncpa [#allocation4], 0  ;;  %s1000_s15 = smov [#allocation2]  }
   0x2   :  { %s20_s16 = sshll.u32 %s1000_s15, 4  ;;  %s21_s16 = int_to_ptr.vmem [resolvable:$true] %s20_s16 }
   0x3   :  { %s964_s17 = scalar_lea.vmem %s21_s16, 512  ;;  %p969_p1 = scmp.lt.s32.totalorder %s21_s16, %s21_s16 }
   0x4   :  { %p965_p0 = scmp.ne.s32.totalorder %s21_s16, %s964_s17  ;;  %p970_p2 = scmp.lt.s32.totalorder %s964_s17, %s964_s17 }
   0x6   :  { %p971_p3 = por %p970_p2, %p969_p1 }
   0x8   :  { %p972_p4 = pnand %p971_p3, %p965_p0 }
   0xa   :  { %975 = shalt.err (!%p972_p4)
}
   0xb   :  { %s1001_s18 = smov 128   ;;  %s1002_s19 = smov 8  }
   0xc   :  { %26 = dma.hbm_to_vmem [thread:$0]  %s1328_s2, 512, %s21_s16, [#allocation3], %s1001_s18, %s1001_s18, %s1002_s19  }
   0xd   :  { %996 = dma.done.wait [#allocation3], 512  }
   0xe   :  { %997 = vsyncadd [#allocation3], 4294966784  ;;  %v1003_v0 = vmov 0.0   ;;  %vm1004_vm0 = vmmov 0   ;;  %v1005_v1 = vmov 0   ;;  %v53_v2 = vld [vmem:[#allocation2 + $0x18] sm:$0xff] }
   0xf   :  { %831 = vmatprep.subr.mxu0 %v1003_v0  ;;  %882 = vmatprep.subr.mxu1 %v1003_v0  ;;  %v52_v3 = vld [vmem:[#allocation2 + $0x10] sm:$0xff]  ;;  %v51_v4 = vld [vmem:[#allocation2 + $0x8] sm:$0xff]  ;;  %vm66_vm1 = vcmask 1024   ;;  %v1049_v5 = vld [vmem:[#allocation2] sm:$0xff]  ;;  %vm81_vm2 = vcmask 261120   ;;  %vm55_vm3 = vcmask 7168  }
  0x10   :  { %839 = vmatprep.mubr.msk.f32.mxu0 %vm1004_vm0, %v1003_v0  ;;  %845 = vmatprep.mubr.msk.f32.mxu1 %vm1004_vm0, %v1003_v0  ;;  %v1054_v6 = vld [vmem:[%s1326_s0] sm:$0xff]  ;;  %v1061_v7 = vld [vmem:[%s1326_s0 + $0x10] sm:$0x3]  ;;  %v1069_v9 = vld [vmem:[%s1327_s1 + $0x28] sm:$0x3]  ;;  %s1006_s6 = smov 96  }
  0x11   :  { %900 = vset.pattern.permute.xlu0 %v1005_v1  ;;  %901 = vset.pattern.permute.xlu1 %v1005_v1  ;;  %v43_v8 = vld [vmem:[%s1327_s1 + $0x10] sm:$0x3]  ;;  %v1074_v10 = vld [vmem:[%s1327_s1 + $0x40] sm:$0x3]  ;;  %v68_v12 = vsel %vm66_vm1, %v1069_v9, 0.0  ;;  %v1085_v14 = vld [vmem:[%s1327_s1 + $0x18] sm:$0xff] }
  0x12   :  { %832 = vmatpush3.msra.mxu0 %v53_v2  ;;  %886 = vmatpush3.msra.mxu1 %v53_v2  ;;  %v67_v11 = vsel %vm66_vm1, %v43_v8, 0.0  ;;  %v41_v13 = vld [vmem:[%s1327_s1] sm:$0xff]  ;;  %v70_v16 = vsel %vm66_vm1, %v1074_v10, 0.0  ;;  %v1094_v17 = vld [vmem:[%s1327_s1 + $0x30] sm:$0xff]  ;;  %v57_v19 = vsel %vm55_vm3, %v1085_v14, 0.0  ;;  %v42_v20 = vld [vmem:[%s1327_s1 + $0x8] sm:$0xff] }
  0x13   :  { %833 = vmatprep.subr.mxu0 %v1003_v0  ;;  %883 = vmatprep.subr.mxu1 %v1003_v0  ;;  %v69_v15 = vadd.f32 %v68_v12, %v67_v11  ;;  %v56_v18 = vsel %vm55_vm3, %v41_v13, 0.0  ;;  %v1105_v21 = vld [vmem:[%s1327_s1 + $0x20] sm:$0xff]  ;;  %v59_v23 = vsel %vm55_vm3, %v1094_v17, 0.0  ;;  %v1114_v24 = vld [vmem:[%s1327_s1 + $0x38] sm:$0xff]  ;;  %v61_v25 = vsel %vm55_vm3, %v42_v20, 0.0  ;;  %v1132_v33 = vld [vmem:[%s1326_s0 + $0x8] sm:$0xff] }
  0x14   :  { %834 = vmatpush3.msra.mxu0 %v52_v3  ;;  %887 = vmatpush3.msra.mxu1 %v52_v3  ;;  %v58_v22 = vadd.f32 %v57_v19, %v56_v18  ;;  %v62_v26 = vsel %vm55_vm3, %v1105_v21, 0.0  ;;  %v64_v29 = vsel %vm55_vm3, %v1114_v24, 0.0  ;;  %v35_v36 = vld [vmem:[%s1326_s0 + $0x18] sm:$0xff]  ;;  %v38_v37 = vld [vmem:[%s1326_s0 + $0x30] sm:$0xff]  ;;  %v36_v38 = vld [vmem:[%s1326_s0 + $0x20] sm:$0xff]  ;;  %vm484_vm4 = vcmask 130048  }
  0x15   :  { %835 = vmatprep.subr.mxu0 %v1003_v0  ;;  %884 = vmatprep.subr.mxu1 %v1003_v0  ;;  %v71_v27 = vadd.f32 %v70_v16, %v69_v15  ;;  %v63_v28 = vadd.f32 %v62_v26, %v61_v25  ;;  %v39_v39 = vld [vmem:[%s1326_s0 + $0x38] sm:$0xff]  ;;  %v37_v40 = vld [vmem:[%s1326_s0 + $0x28] sm:$0x3]  ;;  %v40_v41 = vld [vmem:[%s1326_s0 + $0x40] sm:$0x3]  ;;  %vm491_vm5 = vcmask 123904  }
  0x16   :  { %836 = vmatpush3.msra.mxu0 %v51_v4  ;;  %888 = vmatpush3.msra.mxu1 %v51_v4  ;;  %v60_v30 = vadd.f32 %v59_v23, %v58_v22  ;;  %v809_v53 = vld [vmem:[%s1329_s3] ss:$0 sm:$0xff]  ;;  %s1007_s3 = smov 112   ;;  %vm517_vm6 = vcmask 1041408   ;;  %vm583_vm7 = vcmask 654848   ;;  %vm594_vm8 = vcmask 648704  }
  0x17   :  { %837 = vmatprep.subr.mxu0 %v1003_v0  ;;  %885 = vmatprep.subr.mxu1 %v1003_v0  ;;  %v74_v31 = vmax.f32 %v71_v27, 2.0  ;;  %v65_v32 = vadd.f32 %v64_v29, %v63_v28  ;;  %s1008_s7 = smov 64   ;;  %vm732_vm9 = vcmask 786048   ;;  %vm743_vm10 = vcmask 779904   ;;  %s1009_s8 = smov [#allocation5]  }
  0x18   :  { %838 = vmatpush3.msra.mxu0 %v1049_v5  ;;  %889 = vmatpush3.msra.mxu1 %v1049_v5  ;;  %v72_v34 = vmax.f32 %v60_v30, 2.0  ;;  %s788_s9 = sshll.u32 %s1009_s8, 4  ;;  %vm781_vm11 = vcmask 254976   ;;  %s789_s9 = int_to_ptr.vmem [resolvable:$true] %s788_s9 }
  0x19   :  { %840 = vmatmul.mubr.msk.f32.vlgmr.msra.gmra.mxu0 %vm81_vm2, %v1054_v6  ;;  %846 = vmatmul.mubr.msk.f32.vlgmr.msra.gmra.mxu1 %vm81_vm2, %v1061_v7  ;;  %902 = vrcp.f32 %v74_v31  ;;  %v73_v35 = vmax.f32 %v65_v32, 2.0  ;;  %s976_s10 = scalar_lea.vmem %s789_s9, 384  ;;  %p981_p6 = scmp.lt.s32.totalorder %s789_s9, %s789_s9 }
  0x1a   :  { %848 = vmatprep.subr.mxu1 %v1003_v0  ;;  %865 = vmatprep.subr.mxu0 %v1003_v0  ;;  %904 = vrcp.f32 %v72_v34  ;;  %p977_p5 = scmp.ne.s32.totalorder %s789_s9, %s976_s10  ;;  %p982_p7 = scmp.lt.s32.totalorder %s976_s10, %s976_s10 }
  0x1b   :  { %849 = vmatpush3.msra.mxu1 %v53_v2  ;;  %866 = vmatpush3.msra.mxu0 %v53_v2  ;;  %906 = vrcp.f32 %v73_v35 }
  0x1c   :  { %850 = vmatprep.subr.mxu1 %v1003_v0  ;;  %867 = vmatprep.subr.mxu0 %v1003_v0  ;;  %p983_p8 = por %p982_p7, %p981_p6 }
  0x1d   :  { %842 = vmatprep.mubr.msk.f32.mxu0 %vm1004_vm0, %v1003_v0  ;;  %851 = vmatpush3.msra.mxu1 %v52_v3 }
  0x1e   :  { %868 = vmatpush3.msra.mxu0 %v52_v3  ;;  %852 = vmatprep.subr.mxu1 %v1003_v0  ;;  %p984_p9 = pnand %p983_p8, %p977_p5 }
  0x1f   :  { %843 = vmatmul.mubr.msk.f32.gmra.mxu0 %vm81_vm2, %v1132_v33  ;;  %869 = vmatprep.subr.mxu0 %v1003_v0 }
  0x20   :  { %853 = vmatpush3.msra.mxu1 %v51_v4  ;;  %870 = vmatpush3.msra.mxu0 %v51_v4 }
  0x21   :  { %854 = vmatprep.subr.mxu1 %v1003_v0  ;;  %871 = vmatprep.subr.mxu0 %v1003_v0 }
  0x22   :  { %855 = vmatpush3.msra.mxu1 %v1049_v5  ;;  %856 = vmatprep.mubr.msk.f32.mxu1 %vm1004_vm0, %v1003_v0 }
  0x23   :  { %872 = vmatpush3.msra.mxu0 %v1049_v5  ;;  %873 = vmatprep.mubr.msk.f32.mxu0 %vm1004_vm0, %v1003_v0 }
  0x24   :  { %857 = vmatmul.mubr.msk.f32.vlgmr.msra.gmra.mxu1 %vm81_vm2, %v35_v36  ;;  %874 = vmatmul.mubr.msk.f32.vlgmr.msra.gmra.mxu0 %vm81_vm2, %v38_v37 }
  0x25   :  { %859 = vmatprep.mubr.msk.f32.mxu1 %vm1004_vm0, %v1003_v0  ;;  %876 = vmatprep.mubr.msk.f32.mxu0 %vm1004_vm0, %v1003_v0 }
  0x26   :  { %v903_v42 = vpop.eup %902 }
  0x27   :  { %v905_v43 = vpop.eup %904  ;;  %388 = vperm.xlu0 %900, %v903_v42   ;;  %v375_v44 = vmul.f32 %v903_v42, %v1074_v10  ;;  %v372_v45 = vmul.f32 %v903_v42, %v1069_v9 }
  0x28   :  { %860 = vmatmul.mubr.msk.f32.gmra.mxu1 %vm81_vm2, %v36_v38  ;;  %877 = vmatmul.mubr.msk.f32.gmra.mxu0 %vm81_vm2, %v39_v39  ;;  %v907_v46 = vpop.eup %906  ;;  %v373_v47 = vmul.f32 %v905_v43, %v1094_v17  ;;  %v370_v49 = vmul.f32 %v905_v43, %v1085_v14 }
  0x29   :  { %862 = vmatprep.mubr.msk.f32.mxu1 %vm1004_vm0, %v1003_v0  ;;  %879 = vmatprep.mubr.msk.f32.mxu0 %vm1004_vm0, %v1003_v0  ;;  %v374_v48 = vmul.f32 %v907_v46, %v1114_v24  ;;  %v371_v50 = vmul.f32 %v907_v46, %v1105_v21 }
  0x2a   :  { %378 = vperm.xlu1 %901, %v905_v43  }
  0x2b   :  { %418 = vperm.xlu0 %900, %v375_v44  }
  0x2c   :  { %863 = vmatmul.mubr.msk.f32.gmra.mxu1 %vm81_vm2, %v37_v40  ;;  %880 = vmatmul.mubr.msk.f32.gmra.mxu0 %vm81_vm2, %v40_v41 }
  0x2e   :  { %383 = vperm.xlu1 %901, %v907_v46  }
  0x2f   :  { %403 = vperm.xlu0 %900, %v372_v45  }
  0x32   :  { %408 = vperm.xlu1 %901, %v373_v47  }
  0x33   :  { %413 = vperm.xlu0 %900, %v374_v48  }
  0x36   :  { %393 = vperm.xlu1 %901, %v370_v49  }
  0x37   :  { %398 = vperm.xlu0 %900, %v371_v50  }
  0xa2   :  { %v389_v51 = vpop.permute.xlu0 %388 }
  0xa5   :  { %v379_v52 = vpop.permute.xlu1 %378 }
  0xa6   :  { %v419_v56 = vpop.permute.xlu0 %418 }
  0xa9   :  { %v384_v0 = vpop.permute.xlu1 %383 }
  0xaa   :  { %v404_v5 = vpop.permute.xlu0 %403 }
  0xad   :  { %v409_v10 = vpop.permute.xlu1 %408 }
  0xae   :  { %v414_v16 = vpop.permute.xlu0 %413 }
  0xb1   :  { %v394_v27 = vpop.permute.xlu1 %393 }
  0xb2   :  { %v399_v26 = vpop.permute.xlu0 %398 }
  0xd9   :  { %v157_v54 = vpop.f32.mrf.mxu0  ;;  %v167_v55 = vpop.f32.mrf.mxu1 }
  0xda   :  { %v1189_v57 = vadd.f32 %v809_v53, %v157_v54  ;;  %v1191_v58 = vadd.f32 %v809_v53, %v167_v55  ;;  %v423_v59 = vmul.f32 %v389_v51, %v167_v55  ;;  %v421_v62 = vmul.f32 %v379_v52, %v157_v54 }
  0xdb   :  { %v841_v60 = vpop.f32.mrf.mxu0  ;;  %v847_v61 = vpop.f32.mrf.mxu1 }
  0xdc   :  { %v1193_v63 = vadd.f32 %v809_v53, %v423_v59  ;;  %v1197_v2 = vadd.f32 %v809_v53, %v421_v62 }
  0xde   :  { %452 = vrot.lane.b32.xlu1 %v1193_v63, %s1006_s6 }
  0xdf   :  { %v162_v1 = vpop.f32.mrf.mxu0 }
  0xe0   :  { %v1199_v3 = vadd.f32 %v809_v53, %v162_v1  ;;  %v422_v4 = vmul.f32 %v384_v0, %v162_v1 }
  0xe1   :  { %v844_v8 = vpop.f32.mrf.mxu0 }
  0xe2   :  { %v1201_v9 = vadd.f32 %v809_v53, %v422_v4  ;;  %448 = vrot.lane.b32.xlu1 %v1197_v2, %s1006_s6 }
  0xe4   :  { %v246_v11 = vpop.f32.mrf.mxu1  ;;  %v335_v12 = vpop.f32.mrf.mxu0  ;;  %450 = vrot.lane.b32.xlu0 %v1201_v9, %s1006_s6 }
  0xe5   :  { %v427_v13 = vmul.f32 %v409_v10, %v335_v12  ;;  %v424_v32 = vmul.f32 %v394_v27, %v246_v11 }
  0xe6   :  { %v858_v14 = vpop.f32.mrf.mxu1  ;;  %v875_v15 = vpop.f32.mrf.mxu0 }
  0xe7   :  { %v1207_v17 = vadd.f32 %v809_v53, %v427_v13  ;;  %v1223_v37 = vadd.f32 %v809_v53, %v424_v32 }
  0xe8   :  { %v251_v18 = vpop.f32.mrf.mxu1  ;;  %v340_v19 = vpop.f32.mrf.mxu0 }
  0xe9   :  { %v428_v20 = vmul.f32 %v414_v16, %v340_v19  ;;  %460 = vrot.lane.b32.xlu0 %v1207_v17, %s1006_s6  ;;  %v425_v34 = vmul.f32 %v399_v26, %v251_v18 }
  0xea   :  { %v861_v21 = vpop.f32.mrf.mxu1  ;;  %v878_v22 = vpop.f32.mrf.mxu0 }
  0xeb   :  { %v1211_v23 = vadd.f32 %v809_v53, %v428_v20  ;;  %v1225_v38 = vadd.f32 %v809_v53, %v425_v34 }
  0xec   :  { %v256_v24 = vpop.f32.mrf.mxu1  ;;  %v345_v25 = vpop.f32.mrf.mxu0 }
  0xed   :  { %v426_v28 = vmul.f32 %v404_v5, %v256_v24  ;;  %v429_v29 = vmul.f32 %v419_v56, %v345_v25  ;;  %462 = vrot.lane.b32.xlu1 %v1211_v23, %s1006_s6 }
  0xee   :  { %v881_v30 = vpop.f32.mrf.mxu0  ;;  %v864_v31 = vpop.f32.mrf.mxu1 }
  0xef   :  { %v1215_v35 = vadd.f32 %v809_v53, %v426_v28  ;;  %v1217_v36 = vadd.f32 %v809_v53, %v429_v29 }
  0xf1   :  { %458 = vrot.lane.b32.xlu1 %v1215_v35, %s1006_s6  ;;  %464 = vrot.lane.b32.xlu0 %v1217_v36, %s1006_s6 }
  0xf5   :  { %456 = vrot.lane.b32.xlu1 %v1225_v38, %s1006_s6  ;;  %454 = vrot.lane.b32.xlu0 %v1223_v37, %s1006_s6 }
 0x150   :  { %v453_v39 = vpop.permute.xlu1 %452 }
 0x151   :  { %v477_v40 = vmul.f32 %v453_v39, %v1191_v58 }
 0x153   :  { %613 = vrot.lane.b32.xlu0 %v477_v40, %s1007_s3 }
 0x154   :  { %v449_v41 = vpop.permute.xlu1 %448 }
 0x155   :  { %v475_v42 = vmul.f32 %v449_v41, %v1189_v57 }
 0x156   :  { %v451_v43 = vpop.permute.xlu0 %450 }
 0x157   :  { %v476_v44 = vmul.f32 %v451_v43, %v1199_v3  ;;  %609 = vrot.lane.b32.xlu0 %v475_v42, %s1007_s3  ;;  %v485_v59 = vsel %vm484_vm4, %v475_v42, 0.0 }
 0x159   :  { %611 = vrot.lane.b32.xlu1 %v476_v44, %s1007_s3  ;;  %v488_v62 = vsel %vm484_vm4, %v476_v44, 0.0 }
 0x15b   :  { %v461_v45 = vpop.permute.xlu0 %460 }
 0x15c   :  { %v481_v46 = vmul.f32 %v461_v45, %v1189_v57 }
 0x15e   :  { %621 = vrot.lane.b32.xlu1 %v481_v46, %s1007_s3  ;;  %v504_v0 = vsel %vm484_vm4, %v481_v46, 0.0 }
 0x15f   :  { %v463_v47 = vpop.permute.xlu1 %462 }
 0x160   :  { %v482_v48 = vmul.f32 %v463_v47, %v1199_v3 }
 0x162   :  { %623 = vrot.lane.b32.xlu0 %v482_v48, %s1007_s3  ;;  %v507_v60 = vsel %vm484_vm4, %v482_v48, 0.0 }
 0x163   :  { %v459_v49 = vpop.permute.xlu1 %458  ;;  %v465_v50 = vpop.permute.xlu0 %464 }
 0x164   :  { %v480_v51 = vmul.f32 %v459_v49, %v1191_v58  ;;  %v483_v52 = vmul.f32 %v465_v50, %v1191_v58  ;;  %v492_v58 = vsel %vm491_vm5, %v477_v40, 0.0 }
 0x166   :  { %619 = vrot.lane.b32.xlu0 %v480_v51, %s1007_s3  ;;  %625 = vrot.lane.b32.xlu1 %v483_v52, %s1007_s3  ;;  %v501_v1 = vsel %vm491_vm5, %v480_v51, 0.0 }
 0x167   :  { %v457_v53 = vpop.permute.xlu1 %456  ;;  %v455_v54 = vpop.permute.xlu0 %454 }
 0x168   :  { %v479_v55 = vmul.f32 %v457_v53, %v1199_v3  ;;  %v478_v56 = vmul.f32 %v455_v54, %v1189_v57  ;;  %v510_v57 = vsel %vm491_vm5, %v483_v52, 0.0 }
 0x16a   :  { %617 = vrot.lane.b32.xlu0 %v479_v55, %s1007_s3  ;;  %615 = vrot.lane.b32.xlu1 %v478_v56, %s1007_s3  ;;  %v495_v61 = vsel %vm484_vm4, %v478_v56, 0.0  ;;  %v498_v3 = vsel %vm484_vm4, %v479_v55, 0.0 }
 0x189   :  { %486 = vadd.xlane.f32.xlu0 %v485_v59 }
 0x18d   :  { %508 = vadd.xlane.f32.xlu0 %v507_v60 }
 0x18e   :  { %493 = vadd.xlane.f32.xlu1 %v492_v58 }
 0x191   :  { %496 = vadd.xlane.f32.xlu0 %v495_v61 }
 0x192   :  { %489 = vadd.xlane.f32.xlu1 %v488_v62 }
 0x195   :  { %511 = vadd.xlane.f32.xlu0 %v510_v57 }
 0x196   :  { %505 = vadd.xlane.f32.xlu1 %v504_v0 }
 0x199   :  { %502 = vadd.xlane.f32.xlu0 %v501_v1 }
 0x19a   :  { %499 = vadd.xlane.f32.xlu1 %v498_v3 }
 0x1c5   :  { %v614_v4 = vpop.permute.xlu0 %613 }
 0x1c6   :  { %v642_v5 = vsel %vm491_vm5, %v614_v4, 0.0 }
 0x1c7   :  { %643 = vadd.xlane.f32.xlu0 %v642_v5 }
 0x1c9   :  { %v610_v8 = vpop.permute.xlu0 %609 }
 0x1ca   :  { %v636_v10 = vsel %vm484_vm4, %v610_v8, 0.0 }
 0x1cb   :  { %v612_v11 = vpop.permute.xlu1 %611  ;;  %637 = vadd.xlane.f32.xlu1 %v636_v10 }
 0x1cc   :  { %v639_v12 = vsel %vm484_vm4, %v612_v11, 0.0 }
 0x1cd   :  { %640 = vadd.xlane.f32.xlu0 %v639_v12 }
 0x1d0   :  { %v622_v13 = vpop.permute.xlu1 %621 }
 0x1d1   :  { %v654_v14 = vsel %vm484_vm4, %v622_v13, 0.0 }
 0x1d2   :  { %655 = vadd.xlane.f32.xlu0 %v654_v14 }
 0x1d4   :  { %v624_v15 = vpop.permute.xlu0 %623 }
 0x1d5   :  { %v657_v16 = vsel %vm484_vm4, %v624_v15, 0.0 }
 0x1d6   :  { %658 = vadd.xlane.f32.xlu1 %v657_v16 }
 0x1d8   :  { %v626_v18 = vpop.permute.xlu1 %625  ;;  %v620_v19 = vpop.permute.xlu0 %619 }
 0x1d9   :  { %v660_v20 = vsel %vm491_vm5, %v626_v18, 0.0  ;;  %v651_v24 = vsel %vm491_vm5, %v620_v19, 0.0 }
 0x1da   :  { %661 = vadd.xlane.f32.xlu1 %v660_v20 }
 0x1dc   :  { %v616_v21 = vpop.permute.xlu1 %615  ;;  %v618_v25 = vpop.permute.xlu0 %617 }
 0x1dd   :  { %v645_v22 = vsel %vm484_vm4, %v616_v21, 0.0  ;;  %v648_v26 = vsel %vm484_vm4, %v618_v25, 0.0 }
 0x1de   :  { %646 = vadd.xlane.f32.xlu0 %v645_v22  ;;  %652 = vadd.xlane.f32.xlu1 %v651_v24 }
 0x1e2   :  { %649 = vadd.xlane.f32.xlu1 %v648_v26 }
 0x212   :  { %v487_v27 = vpop.xlane.xlu0 %486 }
 0x216   :  { %v509_v28 = vpop.xlane.xlu0 %508 }
 0x217   :  { %v494_v29 = vpop.xlane.xlu1 %493 }
 0x218   :  { %v518_v41 = vsel %vm517_vm6, %v494_v29, -inf }
 0x21a   :  { %v497_v30 = vpop.xlane.xlu0 %496 }
 0x21b   :  { %v490_v31 = vpop.xlane.xlu1 %489 }
 0x21c   :  { %v515_v45 = vmax.f32 %v490_v31, %v509_v28 }
 0x21e   :  { %v512_v32 = vpop.xlane.xlu0 %511 }
 0x21f   :  { %v520_v34 = vsel %vm517_vm6, %v512_v32, -inf  ;;  %v506_v39 = vpop.xlane.xlu1 %505 }
 0x220   :  { %v513_v40 = vmax.f32 %v487_v27, %v506_v39  ;;  %v521_v42 = vmax.f32 %v518_v41, %v520_v34 }
 0x222   :  { %v514_v43 = vmax.f32 %v513_v40, %v497_v30  ;;  %v503_v44 = vpop.xlane.xlu0 %502 }
 0x223   :  { %v519_v46 = vsel %vm517_vm6, %v503_v44, -inf  ;;  %v500_v47 = vpop.xlane.xlu1 %499 }
 0x224   :  { %v523_v48 = vsub.f32 %v487_v27, %v514_v43  ;;  %v526_v49 = vsub.f32 %v497_v30, %v514_v43  ;;  %v529_v50 = vsub.f32 %v506_v39, %v514_v43  ;;  %v522_v51 = vmax.f32 %v521_v42, %v519_v46 }
 0x225   :  { %v516_v52 = vmax.f32 %v515_v45, %v500_v47 }
 0x226   :  { %v532_v53 = vmul.f32 1.442695, %v523_v48  ;;  %v538_v54 = vmul.f32 1.442695, %v526_v49  ;;  %v544_v55 = vmul.f32 1.442695, %v529_v50  ;;  %v525_v56 = vsub.f32 %v494_v29, %v522_v51 }
 0x227   :  { %v528_v59 = vsub.f32 %v503_v44, %v522_v51  ;;  %v531_v60 = vsub.f32 %v512_v32, %v522_v51  ;;  %v524_v58 = vsub.f32 %v490_v31, %v516_v52  ;;  %v527_v61 = vsub.f32 %v500_v47, %v516_v52 }
 0x228   :  { %908 = vpow2.f32 %v532_v53  ;;  %v536_v62 = vmul.f32 1.442695, %v525_v56  ;;  %v530_v1 = vsub.f32 %v509_v28, %v516_v52 }
 0x229   :  { %910 = vpow2.f32 %v538_v54  ;;  %v542_v57 = vmul.f32 1.442695, %v528_v59  ;;  %v548_v0 = vmul.f32 1.442695, %v531_v60  ;;  %v534_v3 = vmul.f32 1.442695, %v524_v58 }
 0x22a   :  { %912 = vpow2.f32 %v544_v55  ;;  %v540_v4 = vmul.f32 1.442695, %v527_v61  ;;  %v546_v5 = vmul.f32 1.442695, %v530_v1 }
 0x22b   :  { %914 = vpow2.f32 %v536_v62 }
 0x22c   :  { %916 = vpow2.f32 %v542_v57 }
 0x22d   :  { %918 = vpow2.f32 %v548_v0 }
 0x22e   :  { %920 = vpow2.f32 %v534_v3 }
 0x22f   :  { %922 = vpow2.f32 %v540_v4 }
 0x230   :  { %924 = vpow2.f32 %v546_v5 }
 0x235   :  { %v909_v8 = vpop.eup %908 }
 0x236   :  { %v911_v10 = vpop.eup %910 }
 0x237   :  { %v913_v11 = vpop.eup %912  ;;  %v550_v12 = vadd.f32 %v911_v10, %v909_v8 }
 0x238   :  { %v915_v13 = vpop.eup %914 }
 0x239   :  { %v917_v14 = vpop.eup %916  ;;  %v551_v15 = vadd.f32 %v913_v11, %v550_v12  ;;  %v554_v16 = vsel %vm517_vm6, %v915_v13, 0.0 }
 0x23a   :  { %v919_v18 = vpop.eup %918  ;;  %v555_v19 = vsel %vm517_vm6, %v917_v14, 0.0 }
 0x23b   :  { %v921_v20 = vpop.eup %920  ;;  %v556_v21 = vadd.f32 %v555_v19, %v554_v16  ;;  %926 = vrcp.f32 %v551_v15  ;;  %v557_v24 = vsel %vm517_vm6, %v919_v18, 0.0 }
 0x23c   :  { %v923_v22 = vpop.eup %922 }
 0x23d   :  { %v552_v25 = vadd.f32 %v923_v22, %v921_v20  ;;  %v558_v26 = vadd.f32 %v557_v24, %v556_v21  ;;  %v925_v27 = vpop.eup %924 }
 0x23f   :  { %v553_v28 = vadd.f32 %v925_v27, %v552_v25  ;;  %928 = vrcp.f32 %v558_v26 }
 0x241   :  { %930 = vrcp.f32 %v553_v28 }
 0x248   :  { %v927_v29 = vpop.eup %926 }
 0x249   :  { %v560_v30 = vmul.f32 0.25, %v927_v29 }
 0x24b   :  { %v565_v31 = vmul.f32 %v909_v8, %v560_v30  ;;  %v568_v32 = vmul.f32 %v911_v10, %v560_v30  ;;  %v571_v34 = vmul.f32 %v913_v11, %v560_v30 }
 0x24c   :  { %v929_v39 = vpop.eup %928 }
 0x24d   :  { %v574_v40 = vmul.f32 %v565_v31, %v1197_v2  ;;  %v577_v41 = vmul.f32 %v568_v32, %v1223_v37  ;;  %v580_v42 = vmul.f32 %v571_v34, %v1207_v17  ;;  %v564_v43 = vmul.f32 0.25, %v929_v39 }
 0x24e   :  { %v931_v44 = vpop.eup %930 }
 0x24f   :  { %v584_v45 = vsel %vm583_vm7, %v574_v40, 0.0  ;;  %v585_v46 = vsel %vm583_vm7, %v577_v41, 0.0  ;;  %v562_v47 = vmul.f32 0.25, %v931_v44  ;;  %v567_v49 = vmul.f32 %v915_v13, %v564_v43 }
 0x250   :  { %v586_v48 = vadd.f32 %v585_v46, %v584_v45  ;;  %v570_v50 = vmul.f32 %v917_v14, %v564_v43  ;;  %v587_v51 = vsel %vm583_vm7, %v580_v42, 0.0  ;;  %v573_v62 = vmul.f32 %v919_v18, %v564_v43  ;;  %v644_v5 = vpop.xlane.xlu0 %643 }
 0x251   :  { %v566_v52 = vmul.f32 %v921_v20, %v562_v47  ;;  %v569_v53 = vmul.f32 %v923_v22, %v562_v47  ;;  %v572_v54 = vmul.f32 %v925_v27, %v562_v47  ;;  %v576_v56 = vmul.f32 %v567_v49, %v1193_v63 }
 0x252   :  { %v588_v55 = vadd.f32 %v587_v51, %v586_v48  ;;  %v579_v59 = vmul.f32 %v570_v50, %v1215_v35  ;;  %v582_v10 = vmul.f32 %v573_v62, %v1217_v36  ;;  %v667_v22 = vsel %vm517_vm6, %v644_v5, -inf }
 0x253   :  { %v575_v60 = vmul.f32 %v566_v52, %v1201_v9  ;;  %v578_v58 = vmul.f32 %v569_v53, %v1225_v38  ;;  %v581_v61 = vmul.f32 %v572_v54, %v1211_v23  ;;  %v595_v1 = vsel %vm594_vm8, %v576_v56, 0.0 }
 0x254   :  { %752 = vrot.lane.b32.xlu0 %v588_v55, %s1008_s7  ;;  %v596_v3 = vsel %vm594_vm8, %v579_v59, 0.0  ;;  %v638_v13 = vpop.xlane.xlu1 %637  ;;  %v598_v14 = vsel %vm594_vm8, %v582_v10, 0.0 }
 0x255   :  { %v589_v57 = vsel %vm583_vm7, %v575_v60, 0.0  ;;  %v590_v0 = vsel %vm583_vm7, %v578_v58, 0.0  ;;  %v592_v8 = vsel %vm583_vm7, %v581_v61, 0.0  ;;  %v597_v12 = vadd.f32 %v596_v3, %v595_v1 }
 0x256   :  { %v591_v4 = vadd.f32 %v590_v0, %v589_v57  ;;  %v641_v16 = vpop.xlane.xlu0 %640 }
 0x257   :  { %v599_v15 = vadd.f32 %v598_v14, %v597_v12 }
 0x258   :  { %v593_v11 = vadd.f32 %v592_v8, %v591_v4 }
 0x25a   :  { %754 = vrot.lane.b32.xlu1 %v593_v11, %s1008_s7 }
 0x25b   :  { %v656_v19 = vpop.xlane.xlu0 %655 }
 0x25c   :  { %v663_v24 = vmax.f32 %v638_v13, %v656_v19 }
 0x25e   :  { %756 = vrot.lane.b32.xlu1 %v599_v15, %s1008_s7 }
 0x25f   :  { %v659_v18 = vpop.xlane.xlu1 %658 }
 0x260   :  { %v665_v31 = vmax.f32 %v641_v16, %v659_v18 }
 0x263   :  { %v662_v20 = vpop.xlane.xlu1 %661 }
 0x264   :  { %v669_v21 = vsel %vm517_vm6, %v662_v20, -inf }
 0x265   :  { %v670_v25 = vmax.f32 %v667_v22, %v669_v21 }
 0x267   :  { %v653_v26 = vpop.xlane.xlu1 %652  ;;  %v647_v27 = vpop.xlane.xlu0 %646 }
 0x268   :  { %v668_v28 = vsel %vm517_vm6, %v653_v26, -inf  ;;  %v664_v29 = vmax.f32 %v663_v24, %v647_v27 }
 0x269   :  { %v671_v30 = vmax.f32 %v670_v25, %v668_v28 }
 0x26a   :  { %v672_v32 = vsub.f32 %v638_v13, %v664_v29  ;;  %v675_v34 = vsub.f32 %v647_v27, %v664_v29  ;;  %v678_v42 = vsub.f32 %v656_v19, %v664_v29 }
 0x26b   :  { %v674_v39 = vsub.f32 %v644_v5, %v671_v30  ;;  %v677_v40 = vsub.f32 %v653_v26, %v671_v30  ;;  %v680_v41 = vsub.f32 %v662_v20, %v671_v30  ;;  %v650_v43 = vpop.xlane.xlu1 %649 }
 0x26c   :  { %v681_v44 = vmul.f32 1.442695, %v672_v32  ;;  %v666_v45 = vmax.f32 %v665_v31, %v650_v43  ;;  %v687_v49 = vmul.f32 1.442695, %v675_v34  ;;  %v693_v52 = vmul.f32 1.442695, %v678_v42 }
 0x26d   :  { %v685_v46 = vmul.f32 1.442695, %v674_v39  ;;  %v691_v47 = vmul.f32 1.442695, %v677_v40  ;;  %v697_v48 = vmul.f32 1.442695, %v680_v41 }
 0x26e   :  { %932 = vpow2.f32 %v681_v44  ;;  %v673_v50 = vsub.f32 %v641_v16, %v666_v45  ;;  %v676_v51 = vsub.f32 %v650_v43, %v666_v45  ;;  %v679_v53 = vsub.f32 %v659_v18, %v666_v45 }
 0x26f   :  { %934 = vpow2.f32 %v685_v46 }
 0x270   :  { %936 = vpow2.f32 %v691_v47  ;;  %v683_v54 = vmul.f32 1.442695, %v673_v50  ;;  %v689_v55 = vmul.f32 1.442695, %v676_v51  ;;  %v695_v56 = vmul.f32 1.442695, %v679_v53 }
 0x271   :  { %938 = vpow2.f32 %v697_v48 }
 0x272   :  { %940 = vpow2.f32 %v687_v49 }
 0x273   :  { %942 = vpow2.f32 %v693_v52 }
 0x274   :  { %944 = vpow2.f32 %v683_v54 }
 0x275   :  { %946 = vpow2.f32 %v689_v55 }
 0x276   :  { %948 = vpow2.f32 %v695_v56 }
 0x27b   :  { %v933_v59 = vpop.eup %932 }
 0x27c   :  { %v935_v60 = vpop.eup %934 }
 0x27d   :  { %v937_v58 = vpop.eup %936  ;;  %v703_v61 = vsel %vm517_vm6, %v935_v60, 0.0 }
 0x27e   :  { %v939_v62 = vpop.eup %938  ;;  %v704_v57 = vsel %vm517_vm6, %v937_v58, 0.0 }
 0x27f   :  { %v941_v0 = vpop.eup %940  ;;  %v705_v1 = vadd.f32 %v704_v57, %v703_v61  ;;  %v706_v5 = vsel %vm517_vm6, %v939_v62, 0.0 }
 0x280   :  { %v943_v3 = vpop.eup %942  ;;  %v699_v4 = vadd.f32 %v941_v0, %v933_v59 }
 0x281   :  { %v945_v8 = vpop.eup %944  ;;  %v707_v10 = vadd.f32 %v706_v5, %v705_v1 }
 0x282   :  { %v947_v11 = vpop.eup %946  ;;  %v700_v12 = vadd.f32 %v943_v3, %v699_v4 }
 0x283   :  { %v701_v13 = vadd.f32 %v947_v11, %v945_v8  ;;  %950 = vrcp.f32 %v707_v10  ;;  %v949_v14 = vpop.eup %948 }
 0x284   :  { %952 = vrcp.f32 %v700_v12 }
 0x285   :  { %v702_v15 = vadd.f32 %v949_v14, %v701_v13 }
 0x287   :  { %954 = vrcp.f32 %v702_v15 }
 0x290   :  { %v951_v16 = vpop.eup %950 }
 0x291   :  { %v953_v18 = vpop.eup %952  ;;  %v713_v19 = vmul.f32 0.25, %v951_v16 }
 0x292   :  { %v709_v20 = vmul.f32 0.25, %v953_v18 }
 0x293   :  { %v716_v21 = vmul.f32 %v935_v60, %v713_v19  ;;  %v719_v22 = vmul.f32 %v937_v58, %v713_v19  ;;  %v722_v39 = vmul.f32 %v939_v62, %v713_v19 }
 0x294   :  { %v955_v24 = vpop.eup %954  ;;  %v714_v25 = vmul.f32 %v933_v59, %v709_v20  ;;  %v717_v26 = vmul.f32 %v941_v0, %v709_v20  ;;  %v720_v27 = vmul.f32 %v943_v3, %v709_v20 }
 0x295   :  { %v711_v28 = vmul.f32 0.25, %v955_v24  ;;  %v725_v29 = vmul.f32 %v716_v21, %v1193_v63  ;;  %v728_v30 = vmul.f32 %v719_v22, %v1215_v35  ;;  %v731_v47 = vmul.f32 %v722_v39, %v1217_v36 }
 0x296   :  { %v723_v31 = vmul.f32 %v714_v25, %v1197_v2  ;;  %v726_v32 = vmul.f32 %v717_v26, %v1223_v37  ;;  %v729_v34 = vmul.f32 %v720_v27, %v1207_v17 }
 0x297   :  { %v715_v40 = vmul.f32 %v945_v8, %v711_v28  ;;  %v718_v41 = vmul.f32 %v947_v11, %v711_v28  ;;  %v721_v42 = vmul.f32 %v949_v14, %v711_v28  ;;  %v744_v45 = vsel %vm743_vm10, %v725_v29, 0.0 }
 0x298   :  { %v733_v43 = vsel %vm732_vm9, %v723_v31, 0.0  ;;  %v734_v44 = vsel %vm732_vm9, %v726_v32, 0.0  ;;  %v745_v63 = vsel %vm743_vm10, %v728_v30, 0.0  ;;  %v736_v17 = vsel %vm732_vm9, %v729_v34, 0.0 }
 0x299   :  { %v735_v35 = vadd.f32 %v734_v44, %v733_v43  ;;  %v724_v46 = vmul.f32 %v715_v40, %v1201_v9  ;;  %v727_v2 = vmul.f32 %v718_v41, %v1225_v38  ;;  %v730_v37 = vmul.f32 %v721_v42, %v1211_v23 }
 0x29a   :  { %v746_v51 = vadd.f32 %v745_v63, %v744_v45  ;;  %v747_v38 = vsel %vm743_vm10, %v731_v47, 0.0 }
 0x29b   :  { %v737_v48 = vadd.f32 %v736_v17, %v735_v35  ;;  %v738_v49 = vsel %vm732_vm9, %v724_v46, 0.0  ;;  %v739_v50 = vsel %vm732_vm9, %v727_v2, 0.0  ;;  %v741_v53 = vsel %vm732_vm9, %v730_v37, 0.0 }
 0x29c   :  { %v740_v52 = vadd.f32 %v739_v50, %v738_v49  ;;  %v748_v54 = vadd.f32 %v747_v38, %v746_v51 }
 0x29d   :  { %764 = vrot.lane.b32.xlu0 %v737_v48, %s1008_s7 }
 0x29e   :  { %v742_v9 = vadd.f32 %v741_v53, %v740_v52 }
 0x2a0   :  { %766 = vrot.lane.b32.xlu1 %v742_v9, %s1008_s7 }
 0x2a1   :  { %768 = vrot.lane.b32.xlu0 %v748_v54, %s1008_s7 }
 0x2c6   :  { %v753_v36 = vpop.permute.xlu0 %752 }
 0x2cc   :  { %v755_v23 = vpop.permute.xlu1 %754 }
 0x2d0   :  { %v757_v55 = vpop.permute.xlu1 %756 }
 0x30f   :  { %v765_v56 = vpop.permute.xlu0 %764 }
 0x310   :  { %v773_v59 = vsel %vm484_vm4, %v753_v36, %v765_v56 }
 0x311   :  { %v776_v60 = vadd.f32 %v773_v59, %v1054_v6 }
 0x312   :  { %v767_v58 = vpop.permute.xlu1 %766 }
 0x313   :  { %779 = vst.msk [vmem:[#allocation5] sm:$0xff] %vm81_vm2, %v776_v60  ;;  %v774_v61 = vsel %vm484_vm4, %v755_v23, %v767_v58  ;;  %v769_v62 = vpop.permute.xlu0 %768 }
 0x314   :  { %v777_v57 = vadd.f32 %v774_v61, %v1132_v33  ;;  %v775_v0 = vsel %vm484_vm4, %v757_v55, %v769_v62 }
 0x315   :  { %v778_v1 = vadd.f32 %v775_v0, %v1061_v7 }
 0x316   :  { %780 = vst.msk [vmem:[#allocation5 + $0x8] sm:$0xff] %vm81_vm2, %v777_v57 }
 0x317   :  { %782 = vst.msk [vmem:[#allocation5 + $0x10] sm:$0x3] %vm781_vm11, %v778_v1 }
 0x318   :  { %987 = shalt.err (!%p984_p9)
}
 0x319   :  { %794 = dma.vmem_to_hbm [thread:$0]  %s789_s9, 384, %s1330_s4, [#allocation4], %s1001_s18, %s1001_s18, %s1002_s19  }
 0x31a   :  { %998 = dma.done.wait [#allocation4], 384  }
 0x31b   :  { %999 = vsyncadd [#allocation4], 4294966912 }
 0x31c   :  { %798 = vsyncpa [#allocation3], 1 }
 0x31d   :  { %799 = vsyncpa [#allocation4], 1 }

</bundles_post_ra>
